<compile_context>
chip_gen: v7x
topology: tpu7x:2x2x1
jax: 0.10.0
libtpu: 0.0.40
codegen_flags: <defaults>
</compile_context>

<pallas_src>
import jax
import jax.numpy as jnp
from jax import lax
from jax.experimental import pallas as pl
from jax.experimental.pallas import tpu as pltpu

KTAPS = 27          # 3*3*3 taps
CENTER_TAP = 13     # kd=kh=kw=1 -> the unshifted x (used by the 1x1x1 conv)
EPS = 1e-5
LANE = 128
SUBL = 16           # bf16 sublane packing granularity


def _round_up(a, b):
    return -(-a // b) * b


def conv3d_block_kernel(x_ref, w_ref, o_ref):
    """One M-tile, transposed orientation (channels on sublanes, M on lanes).

    g = W_fused^T (2*CR, KP) @ x_im2col^T (KP, tm) on the MXU, f32 accumulation:
      rows [0,  CR)  : BN1-scaled 3x3x3 conv (+ folded conv-bias/BN1 shift)
      rows [CR, 2CR) : BN2-scaled 1x1x1 conv (+ folded BN2 shift)
    The shifts ride a 1.0 "bias" row of x, so the epilogue is just two ReLUs
    and the add of the two branches, all in f32 (bf16 cast only at the store).
    """
    cr = o_ref.shape[0]
    g = jnp.dot(w_ref[...], x_ref[...], preferred_element_type=jnp.float32)
    main = jnp.maximum(g[:cr, :], 0.0)      # ReLU(BN1(conv3x3x3 + bias))
    resid = g[cr:, :]                       # BN2(conv1x1x1)
    o_ref[...] = jnp.maximum(main + resid, 0.0).astype(o_ref.dtype)


def conv3d_block0_forward(x_ncdhw, params, *, tm_max=2048,
                          vmem_limit_bytes=32 * 1024 * 1024):
    N, Cin, D, H, W = x_ncdhw.shape
    w3 = params["w3"]                       # (Cout, Cin, 3, 3, 3)  torch layout
    b3 = params["b3"]                       # (Cout,)
    g1, be1, m1, v1 = params["bn1"]         # BN after 3x3x3 conv
    w1 = params["w1"]                       # (Cout, Cin, 1, 1, 1)
    g2, be2, m2, v2 = params["bn2"]         # BN after 1x1x1 conv
    Cout = w3.shape[0]

    M = N * D * H * W
    K = KTAPS * Cin
    KB = K + 1                              # +1 bias row of ones (folds t1/t2)
    KP = _round_up(KB, SUBL)                # sublane-aligned contraction rows
    CR = _round_up(Cout, SUBL)              # bf16-packed channel rows / branch

    # ---- implicit-GEMM RHS: x^T im2col (KP, M), tap-major / channel-minor K ----
    xt = jnp.transpose(x_ncdhw, (1, 0, 2, 3, 4))                    # (Cin,N,D,H,W)
    xp = jnp.pad(xt, ((0, 0), (0, 0), (1, 1), (1, 1), (1, 1)))      # padding=1
    taps = [
        xp[:, :, kd:kd + D, kh:kh + H, kw:kw + W].reshape(Cin, M)
        for kd in range(3) for kh in range(3) for kw in range(3)
    ]
    x_k = jnp.concatenate(taps + [jnp.ones((1, M), xp.dtype)], axis=0)  # (K+1, M)
    x_k = jnp.pad(x_k, ((0, KP - KB), (0, 0))).astype(jnp.bfloat16)

    # ---- fused, transposed weights: fold conv bias + BN(eval) into the GEMM ----
    s1 = g1 / jnp.sqrt(v1 + EPS)
    t1 = (b3 - m1) * s1 + be1
    s2 = g2 / jnp.sqrt(v2 + EPS)
    t2 = be2 - m2 * s2

    w3_t = jnp.transpose(w3, (0, 2, 3, 4, 1)).reshape(Cout, K) * s1[:, None]
    w1_t = w1[:, :, 0, 0, 0] * s2[:, None]                          # (Cout, Cin)

    w_fused = jnp.zeros((2 * CR, KP), jnp.float32)
    w_fused = w_fused.at[:Cout, :K].set(w3_t)
    w_fused = w_fused.at[:Cout, K].set(t1)                          # bias row col
    w_fused = w_fused.at[CR:CR + Cout,
                         CENTER_TAP * Cin:(CENTER_TAP + 1) * Cin].set(w1_t)
    w_fused = w_fused.at[CR:CR + Cout, K].set(t2)
    w_fused = w_fused.astype(jnp.bfloat16)

    # ---- tiling: large lane-dense M tiles; do NOT shrink tm to force steps ----
    # (on v7x, real workloads give >= 4 parallel steps at tm=2048 so both
    #  TensorCores double-buffer; single-core chips gain nothing from smaller tm)
    tm = min(tm_max, _round_up(M, LANE))
    Mp = _round_up(M, tm)
    if Mp > M:
        x_k = jnp.pad(x_k, ((0, 0), (0, Mp - M)))
    grid = (Mp // tm,)

    # Double-buffered I/O plus f32 intermediates; must stay under the per-core
    # scoped budget (32 MiB on v7x; physical VMEM is 64 MiB/core there,
    # 128 MiB on v5e/v6e).  ~1.6 MiB at tm=2048 -> huge headroom.
    est_vmem = (2 * (KP * tm * 2 + 2 * CR * KP * 2 + CR * tm * 2)
                + 2 * (2 * CR * tm * 4))
    assert est_vmem < vmem_limit_bytes, (est_vmem, vmem_limit_bytes)

    out_t = pl.pallas_call(
        conv3d_block_kernel,
        out_shape=jax.ShapeDtypeStruct((CR, Mp), jnp.bfloat16),
        grid_spec=pltpu.PrefetchScalarGridSpec(
            num_scalar_prefetch=0,
            grid=grid,
            in_specs=[
                pl.BlockSpec((KP, tm), lambda i: (0, i)),        # x^T im2col tile
                pl.BlockSpec((2 * CR, KP), lambda i: (0, 0)),    # fused weights
            ],
            out_specs=pl.BlockSpec((CR, tm), lambda i: (0, i)),  # out^T tile
        ),
        compiler_params=pltpu.CompilerParams(
            dimension_semantics=("parallel",),
            vmem_limit_bytes=vmem_limit_bytes,
        ),
    )(x_k, w_fused)

    # strip channel/M padding, back to PyTorch NCDHW
    out = out_t[:Cout, :M].reshape(Cout, N, D, H, W)
    return jnp.transpose(out, (1, 0, 2, 3, 4)).astype(x_ncdhw.dtype)


def reference_forward(x, params):
    """Pure-JAX f32 reference (lax 3-D conv) with identical semantics."""
    w3, b3 = params["w3"], params["b3"]
    g1, be1, m1, v1 = params["bn1"]
    w1 = params["w1"]
    g2, be2, m2, v2 = params["bn2"]
    dn = ("NCDHW", "OIDHW", "NCDHW")

    def bn(z, g, be, m, v):
        sh = (1, -1, 1, 1, 1)
        return (z - m.reshape(sh)) / jnp.sqrt(v.reshape(sh) + EPS) * g.reshape(sh) + be.reshape(sh)

    y = lax.conv_general_dilated(x, w3, (1, 1, 1), ((1, 1), (1, 1), (1, 1)),
                                 dimension_numbers=dn, precision=lax.Precision.HIGHEST)
    y = y + b3[None, :, None, None, None]
    y = jnp.maximum(bn(y, g1, be1, m1, v1), 0.0)
    r = lax.conv_general_dilated(x, w1, (1, 1, 1), "VALID",
                                 dimension_numbers=dn, precision=lax.Precision.HIGHEST)
    r = bn(r, g2, be2, m2, v2)
    return jnp.maximum(y + r, 0.0)


if __name__ == "__main__":
    key = jax.random.PRNGKey(0)
    N, Cin, Cout, D, H, W = 2, 4, 8, 8, 8, 8
    ks = jax.random.split(key, 12)

    x = jax.random.normal(ks[0], (N, Cin, D, H, W), jnp.float32)
    params = {
        "w3": jax.random.normal(ks[1], (Cout, Cin, 3, 3, 3), jnp.float32) * 0.2,
        "b3": jax.random.normal(ks[2], (Cout,), jnp.float32) * 0.1,
        "bn1": (
            jax.random.normal(ks[3], (Cout,), jnp.float32) * 0.1 + 1.0,   # gamma
            jax.random.normal(ks[4], (Cout,), jnp.float32) * 0.1,          # beta
            jax.random.normal(ks[5], (Cout,), jnp.float32) * 0.1,          # running_mean
            jax.random.uniform(ks[6], (Cout,), jnp.float32, 0.5, 1.5),     # running_var
        ),
        "w1": jax.random.normal(ks[7], (Cout, Cin, 1, 1, 1), jnp.float32) * 0.2,
        "bn2": (
            jax.random.normal(ks[8], (Cout,), jnp.float32) * 0.1 + 1.0,
            jax.random.normal(ks[9], (Cout,), jnp.float32) * 0.1,
            jax.random.normal(ks[10], (Cout,), jnp.float32) * 0.1,
            jax.random.uniform(ks[11], (Cout,), jnp.float32, 0.5, 1.5),
        ),
    }

    out = jax.block_until_ready(conv3d_block0_forward(x, params))
    ref = jax.block_until_ready(reference_forward(x, params))

    assert out.shape == (N, Cout, D, H, W), out.shape
    err = float(jnp.max(jnp.abs(out - ref)))
    # bf16 MXU operands (K=109 accumulation, ~2-4e-2 worst case at these
    # magnitudes) + bf16-folded shifts + bf16 output store (~1-2e-2) vs an f32
    # HIGHEST reference: budget 1e-1 max-abs.
    assert err < 1e-1, f"max abs error too large: {err}"
    print("KERNEL_OK")
</pallas_src>

<mosaic_0001>
module attributes {stable_mosaic.version = 11 : i64} {
  func.func @conv3d_block_kernel(%arg0: i32, %arg1: memref<112x1024xbf16, #tpu.memory_space<vmem>>, %arg2: memref<32x112xbf16, #tpu.memory_space<vmem>>, %arg3: memref<16x1024xbf16, #tpu.memory_space<vmem>>) attributes {dimension_semantics = [#tpu.dimension_semantics<parallel>], iteration_bounds = array<i64: 1>, scalar_prefetch = 0 : i64, scratch_operands = 0 : i64, tpu.core_type = #tpu.core_type<tc>, window_params = [{transform_indices = @transform_0, window_bounds = array<i64: 112, 1024>}, {pipeline_mode = #tpu.pipeline_mode<synchronous>, transform_indices = @transform_1, window_bounds = array<i64: 32, 112>}, {transform_indices = @transform_2, window_bounds = array<i64: 16, 1024>}]} {
    %c0 = arith.constant 0 : index
    %c0_0 = arith.constant 0 : index
    %0 = vector.load %arg2[%c0, %c0_0] : memref<32x112xbf16, #tpu.memory_space<vmem>>, vector<32x112xbf16>
    %c0_1 = arith.constant 0 : index
    %c0_2 = arith.constant 0 : index
    %1 = vector.load %arg1[%c0_1, %c0_2] : memref<112x1024xbf16, #tpu.memory_space<vmem>>, vector<112x1024xbf16>
    %cst = arith.constant dense<0.000000e+00> : vector<32x1024xf32>
    %2 = tpu.matmul %0, %1, %cst {dimension_numbers = #tpu.dot_dimension_numbers<[1], [0], [0], [1], [0, 0, 1, 1], [], []>} : vector<32x112xbf16>, vector<112x1024xbf16>, vector<32x1024xf32> -> vector<32x1024xf32>
    %3 = vector.extract_strided_slice %2 {offsets = [0, 0], sizes = [16, 1024], strides = [1, 1]} : vector<32x1024xf32> to vector<16x1024xf32>
    %cst_3 = arith.constant 0.000000e+00 : f32
    %4 = vector.broadcast %cst_3 : f32 to vector<16x1024xf32>
    %5 = arith.maximumf %3, %4 : vector<16x1024xf32>
    %6 = vector.extract_strided_slice %2 {offsets = [16, 0], sizes = [16, 1024], strides = [1, 1]} : vector<32x1024xf32> to vector<16x1024xf32>
    %7 = arith.addf %5, %6 : vector<16x1024xf32>
    %cst_4 = arith.constant 0.000000e+00 : f32
    %8 = vector.broadcast %cst_4 : f32 to vector<16x1024xf32>
    %9 = arith.maximumf %7, %8 : vector<16x1024xf32>
    %10 = arith.truncf %9 : vector<16x1024xf32> to vector<16x1024xbf16>
    %c0_5 = arith.constant 0 : index
    %c0_6 = arith.constant 0 : index
    %11 = vector.load %arg3[%c0_5, %c0_6] : memref<16x1024xbf16, #tpu.memory_space<vmem>>, vector<16x1024xbf16>
    tpu.vector_store %arg3[%c0_5, %c0_6], %10 {strides = array<i32>} : memref<16x1024xbf16, #tpu.memory_space<vmem>>, vector<16x1024xbf16>,
    return
  }
  func.func @transform_0(%arg0: i32) -> (i32, i32) {
    %c0_i32 = arith.constant 0 : i32
    %c0_i32_0 = arith.constant 0 : i32
    return %c0_i32, %arg0 : i32, i32
  }
  func.func @transform_1(%arg0: i32) -> (i32, i32) {
    %c0_i32 = arith.constant 0 : i32
    %c0_i32_0 = arith.constant 0 : i32
    %c0_i32_1 = arith.constant 0 : i32
    return %c0_i32, %c0_i32_0 : i32, i32
  }
  func.func @transform_2(%arg0: i32) -> (i32, i32) {
    %c0_i32 = arith.constant 0 : i32
    %c0_i32_0 = arith.constant 0 : i32
    return %c0_i32, %arg0 : i32, i32
  }
}

</mosaic_0001>

<bundles_post_ra>
// kernel: tpu_custom_call.1
= control target key start
LH: loop header
LB: loop body
LE: loop exit
PB: predicated region body
PF: predicated region fallthrough
CT: control target
= control target key end

     0   :  { %7 = vsyncpa [#allocation3], 0  ;;  %s989_s0 = inlined_call_operand.hbm [shape: bf16[112,1024], index: 0, kind: input, shape index: {}]   ;;  %s990_s1 = inlined_call_operand.hbm [shape: bf16[32,112], index: 1, kind: input, shape index: {}]   ;;  %s991_s2 = inlined_call_operand.hbm [shape: bf16[16,1024], index: 2, kind: output, shape index: {}]  }
   0x1   :  { %8 = vsyncpa [#allocation6], 0 }
   0x2   :  { %9 = vsyncpa [#allocation4], 0  ;;  %s896_s9 = smov [#allocation2]   ;;  %s824_s13 = scalar_lea.hbm %s989_s0, 7168 }
   0x3   :  { %s15_s10 = sshll.u32 %s896_s9, 4  ;;  %p825_p0 = scmp.ne.s32.totalorder %s989_s0, %s824_s13  ;;  %s16_s10 = int_to_ptr.vmem [resolvable:$true] %s15_s10 }
   0x4   :  { %p828_p1 = scmp.lt.u32.totalorder %s824_s13, %s989_s0 }
   0x6   :  { %p830_p2 = pnand %p828_p1, %p825_p0 }
   0x8   :  { %833 = shalt.err (!%p830_p2)
}
   0x9   :  { %s834_s18 = scalar_lea.vmem %s16_s10, 7168  ;;  %p839_p4 = scmp.lt.s32.totalorder %s16_s10, %s16_s10 }
   0xa   :  { %p835_p3 = scmp.ne.s32.totalorder %s16_s10, %s834_s18  ;;  %p840_p5 = scmp.lt.s32.totalorder %s834_s18, %s834_s18 }
   0xc   :  { %p841_p6 = por %p840_p5, %p839_p4 }
   0xe   :  { %p842_p7 = pnand %p841_p6, %p835_p3 }
  0x10   :  { %845 = shalt.err (!%p842_p7)
}
  0x11   :  { %s897_s19 = smov 512   ;;  %s898_s20 = smov 32  }
  0x12   :  { %21 = dma.hbm_to_vmem [thread:$0]  %s989_s0, 7168, %s16_s10, [#allocation3], %s897_s19, %s897_s19, %s898_s20  }
  0x13   :  { %s899_s23 = smov [#allocation5]   ;;  %s846_s27 = scalar_lea.hbm %s990_s1, 256 }
  0x14   :  { %s27_s24 = sshll.u32 %s899_s23, 4  ;;  %p847_p8 = scmp.ne.s32.totalorder %s990_s1, %s846_s27  ;;  %s28_s24 = int_to_ptr.vmem [resolvable:$true] %s27_s24 }
  0x15   :  { %p850_p9 = scmp.lt.u32.totalorder %s846_s27, %s990_s1 }
  0x17   :  { %p852_p10 = pnand %p850_p9, %p847_p8 }
  0x19   :  { %855 = shalt.err (!%p852_p10)
}
  0x1a   :  { %s856_s4 = scalar_lea.vmem %s28_s24, 256  ;;  %p861_p12 = scmp.lt.s32.totalorder %s28_s24, %s28_s24 }
  0x1b   :  { %p857_p11 = scmp.ne.s32.totalorder %s28_s24, %s856_s4  ;;  %p862_p13 = scmp.lt.s32.totalorder %s856_s4, %s856_s4 }
  0x1d   :  { %p863_p0 = por %p862_p13, %p861_p12 }
  0x1f   :  { %p864_p1 = pnand %p863_p0, %p857_p11 }
  0x21   :  { %867 = shalt.err (!%p864_p1)
}
  0x22   :  { %s900_s0 = smov 64   ;;  %s901_s5 = smov 4  }
  0x23   :  { %33 = dma.hbm_to_vmem [thread:$0]  %s990_s1, 256, %s28_s24, [#allocation6], %s900_s0, %s900_s0, %s901_s5  }
  0x24   :  { %890 = dma.done.wait [#allocation3], 7168  }
  0x25   :  { %891 = vsyncadd [#allocation3], 4294960128 }
  0x26   :  { %892 = dma.done.wait [#allocation6], 256  }
  0x27   :  { %893 = vsyncadd [#allocation6], 4294967040  ;;  %v902_v0 = vmov 0   ;;  %v45_v1 = vld [vmem:[#allocation2] sm:$0xff]  ;;  %v46_v3 = vld [vmem:[#allocation2 + $0x8] sm:$0xff]  ;;  %vm391_vm0 = vcmask 916480  }
  0x28   :  { %430 = vmatprep.mubr.bf16.mxu0 %v902_v0  ;;  %483 = vmatprep.mubr.bf16.mxu1 %v902_v0  ;;  %v49_v2 = vld [vmem:[#allocation2 + $0x20] sm:$0xff]  ;;  %v50_v5 = vld [vmem:[#allocation2 + $0x28] sm:$0xff]  ;;  %v47_v55 = vld [vmem:[#allocation2 + $0x10] sm:$0xff]  ;;  %s903_s1 = smov [#allocation7]  }
  0x29   :  { %v735_v4 = vcombine.high %v45_v1, %v49_v2  ;;  %v734_v6 = vcombine.low %v45_v1, %v49_v2  ;;  %v53_v7 = vld [vmem:[#allocation2 + $0x40] sm:$0xff]  ;;  %v737_v9 = vcombine.high %v46_v3, %v50_v5  ;;  %v736_v10 = vcombine.low %v46_v3, %v50_v5  ;;  %v54_v12 = vld [vmem:[#allocation2 + $0x48] sm:$0xff]  ;;  %v51_v56 = vld [vmem:[#allocation2 + $0x30] sm:$0xff]  ;;  %s719_s8 = sshll.u32 %s903_s1, 4  ;;  %s720_s8 = int_to_ptr.vmem [resolvable:$true] %s719_s8 }
  0x2a   :  { %v57_v8 = vld [vmem:[#allocation2 + $0x60] sm:$0xff]  ;;  %v58_v13 = vld [vmem:[#allocation2 + $0x68] sm:$0xff]  ;;  %v48_v57 = vld [vmem:[#allocation2 + $0x18] sm:$0xff]  ;;  %v739_v61 = vcombine.high %v47_v55, %v51_v56  ;;  %v738_v5 = vcombine.low %v47_v55, %v51_v56  ;;  %s868_s9 = scalar_lea.vmem %s720_s8, 1024  ;;  %p873_p3 = scmp.lt.s32.totalorder %s720_s8, %s720_s8 }
  0x2b   :  { %v743_v11 = vcombine.high %v53_v7, %v57_v8  ;;  %v61_v14 = vld [vmem:[#allocation2 + $0x80] sm:$0xff]  ;;  %398 = vmatprep.subr.bf16.mxu0 %v735_v4  ;;  %v745_v15 = vcombine.high %v54_v12, %v58_v13  ;;  %v62_v17 = vld [vmem:[#allocation2 + $0x88] sm:$0xff]  ;;  %451 = vmatprep.subr.bf16.mxu1 %v737_v9  ;;  %v742_v19 = vcombine.low %v53_v7, %v57_v8  ;;  %v52_v58 = vld [vmem:[#allocation2 + $0x38] sm:$0xff]  ;;  %p869_p2 = scmp.ne.s32.totalorder %s720_s8, %s868_s9  ;;  %p874_p4 = scmp.lt.s32.totalorder %s868_s9, %s868_s9 }
  0x2c   :  { %v65_v16 = vld [vmem:[#allocation2 + $0xa0] sm:$0xff]  ;;  %v66_v18 = vld [vmem:[#allocation2 + $0xa8] sm:$0xff]  ;;  %399 = vmatpush1.bf16.msra.mxu0 %v734_v6  ;;  %452 = vmatpush1.bf16.msra.mxu1 %v736_v10  ;;  %v744_v20 = vcombine.low %v54_v12, %v58_v13  ;;  %v741_v62 = vcombine.high %v48_v57, %v52_v58  ;;  %v55_v63 = vld [vmem:[#allocation2 + $0x50] sm:$0xff]  ;;  %v740_v6 = vcombine.low %v48_v57, %v52_v58 }
  0x2d   :  { %400 = vmatprep.subr.bf16.mxu0 %v743_v11  ;;  %v751_v21 = vcombine.high %v61_v14, %v65_v16  ;;  %453 = vmatprep.subr.bf16.mxu1 %v745_v15  ;;  %v753_v22 = vcombine.high %v62_v17, %v66_v18  ;;  %v69_v23 = vld [vmem:[#allocation2 + $0xc0] sm:$0xff]  ;;  %v70_v25 = vld [vmem:[#allocation2 + $0xc8] sm:$0xff]  ;;  %v750_v27 = vcombine.low %v61_v14, %v65_v16  ;;  %v59_v1 = vld [vmem:[#allocation2 + $0x70] sm:$0xff]  ;;  %p875_p5 = por %p874_p4, %p873_p3 }
  0x2e   :  { %v73_v24 = vld [vmem:[#allocation2 + $0xe0] sm:$0xff]  ;;  %v74_v26 = vld [vmem:[#allocation2 + $0xe8] sm:$0xff]  ;;  %v752_v28 = vcombine.low %v62_v17, %v66_v18  ;;  %v56_v3 = vld [vmem:[#allocation2 + $0x58] sm:$0xff]  ;;  %v747_v7 = vcombine.high %v55_v63, %v59_v1  ;;  %v746_v13 = vcombine.low %v55_v63, %v59_v1 }
  0x2f   :  { %v759_v29 = vcombine.high %v69_v23, %v73_v24  ;;  %v761_v30 = vcombine.high %v70_v25, %v74_v26  ;;  %v77_v31 = vld [vmem:[#allocation2 + $0x100] sm:$0xff]  ;;  %v78_v33 = vld [vmem:[#allocation2 + $0x108] sm:$0xff]  ;;  %v758_v35 = vcombine.low %v69_v23, %v73_v24  ;;  %v760_v36 = vcombine.low %v70_v25, %v74_v26  ;;  %v60_v4 = vld [vmem:[#allocation2 + $0x78] sm:$0xff]  ;;  %p876_p6 = pnand %p875_p5, %p869_p2 }
  0x30   :  { %401 = vmatpush1.bf16.msra.mxu0 %v742_v19  ;;  %454 = vmatpush1.bf16.msra.mxu1 %v744_v20  ;;  %v81_v32 = vld [vmem:[#allocation2 + $0x120] sm:$0xff]  ;;  %v82_v34 = vld [vmem:[#allocation2 + $0x128] sm:$0xff]  ;;  %v749_v8 = vcombine.high %v56_v3, %v60_v4  ;;  %v63_v9 = vld [vmem:[#allocation2 + $0x90] sm:$0xff]  ;;  %v748_v14 = vcombine.low %v56_v3, %v60_v4 }
  0x31   :  { %402 = vmatprep.subr.bf16.mxu0 %v751_v21  ;;  %455 = vmatprep.subr.bf16.mxu1 %v753_v22  ;;  %v767_v37 = vcombine.high %v77_v31, %v81_v32  ;;  %v769_v38 = vcombine.high %v78_v33, %v82_v34  ;;  %v85_v39 = vld [vmem:[#allocation2 + $0x140] sm:$0xff]  ;;  %v86_v41 = vld [vmem:[#allocation2 + $0x148] sm:$0xff]  ;;  %v766_v43 = vcombine.low %v77_v31, %v81_v32  ;;  %v67_v10 = vld [vmem:[#allocation2 + $0xb0] sm:$0xff] }
  0x32   :  { %v89_v40 = vld [vmem:[#allocation2 + $0x160] sm:$0xff]  ;;  %v90_v42 = vld [vmem:[#allocation2 + $0x168] sm:$0xff]  ;;  %v768_v44 = vcombine.low %v78_v33, %v82_v34  ;;  %v64_v11 = vld [vmem:[#allocation2 + $0x98] sm:$0xff]  ;;  %v755_v15 = vcombine.high %v63_v9, %v67_v10  ;;  %v754_v22 = vcombine.low %v63_v9, %v67_v10 }
  0x33   :  { %v775_v45 = vcombine.high %v85_v39, %v89_v40  ;;  %v777_v46 = vcombine.high %v86_v41, %v90_v42  ;;  %v93_v47 = vld [vmem:[#allocation2 + $0x180] sm:$0xff]  ;;  %v94_v49 = vld [vmem:[#allocation2 + $0x188] sm:$0xff]  ;;  %v774_v51 = vcombine.low %v85_v39, %v89_v40  ;;  %v776_v52 = vcombine.low %v86_v41, %v90_v42  ;;  %v68_v12 = vld [vmem:[#allocation2 + $0xb8] sm:$0xff] }
  0x34   :  { %403 = vmatpush1.bf16.msra.mxu0 %v750_v27  ;;  %456 = vmatpush1.bf16.msra.mxu1 %v752_v28  ;;  %v97_v48 = vld [vmem:[#allocation2 + $0x1a0] sm:$0xff]  ;;  %v98_v50 = vld [vmem:[#allocation2 + $0x1a8] sm:$0xff]  ;;  %v757_v16 = vcombine.high %v64_v11, %v68_v12  ;;  %v71_v17 = vld [vmem:[#allocation2 + $0xd0] sm:$0xff]  ;;  %v756_v23 = vcombine.low %v64_v11, %v68_v12 }
  0x35   :  { %404 = vmatprep.subr.bf16.mxu0 %v759_v29  ;;  %457 = vmatprep.subr.bf16.mxu1 %v761_v30  ;;  %v783_v53 = vcombine.high %v93_v47, %v97_v48  ;;  %v785_v54 = vcombine.high %v94_v49, %v98_v50  ;;  %v782_v59 = vcombine.low %v93_v47, %v97_v48  ;;  %v948_v2 = vld [vmem:[#allocation5] sm:$0xff]   ;;  %v75_v18 = vld [vmem:[#allocation2 + $0xf0] sm:$0xff]  ;;  %v956_v19 = vld [vmem:[#allocation5 + $0x8] sm:$0xff]  }
  0x36   :  { %v784_v60 = vcombine.low %v94_v49, %v98_v50  ;;  %v72_v20 = vld [vmem:[#allocation2 + $0xd8] sm:$0xff]  ;;  %v763_v24 = vcombine.high %v71_v17, %v75_v18  ;;  %v79_v26 = vld [vmem:[#allocation2 + $0x110] sm:$0xff]  ;;  %v762_v30 = vcombine.low %v71_v17, %v75_v18 }
  0x37   :  { %v76_v21 = vld [vmem:[#allocation2 + $0xf8] sm:$0xff]  ;;  %v83_v27 = vld [vmem:[#allocation2 + $0x130] sm:$0xff] }
  0x38   :  { %405 = vmatpush1.bf16.msra.mxu0 %v758_v35  ;;  %458 = vmatpush1.bf16.msra.mxu1 %v760_v36  ;;  %v765_v25 = vcombine.high %v72_v20, %v76_v21  ;;  %v80_v28 = vld [vmem:[#allocation2 + $0x118] sm:$0xff]  ;;  %v764_v31 = vcombine.low %v72_v20, %v76_v21  ;;  %v771_v32 = vcombine.high %v79_v26, %v83_v27  ;;  %v87_v34 = vld [vmem:[#allocation2 + $0x150] sm:$0xff] }
  0x39   :  { %406 = vmatprep.subr.bf16.mxu0 %v767_v37  ;;  %459 = vmatprep.subr.bf16.mxu1 %v769_v38  ;;  %v84_v29 = vld [vmem:[#allocation2 + $0x138] sm:$0xff]  ;;  %v91_v35 = vld [vmem:[#allocation2 + $0x170] sm:$0xff]  ;;  %v770_v38 = vcombine.low %v79_v26, %v83_v27 }
  0x3a   :  { %v773_v33 = vcombine.high %v80_v28, %v84_v29  ;;  %v88_v36 = vld [vmem:[#allocation2 + $0x158] sm:$0xff]  ;;  %v772_v39 = vcombine.low %v80_v28, %v84_v29  ;;  %v779_v40 = vcombine.high %v87_v34, %v91_v35  ;;  %v95_v42 = vld [vmem:[#allocation2 + $0x190] sm:$0xff] }
  0x3b   :  { %v92_v37 = vld [vmem:[#allocation2 + $0x178] sm:$0xff] }
  0x3c   :  { %407 = vmatpush1.bf16.msra.mxu0 %v766_v43  ;;  %460 = vmatpush1.bf16.msra.mxu1 %v768_v44  ;;  %v781_v41 = vcombine.high %v88_v36, %v92_v37  ;;  %v99_v43 = vld [vmem:[#allocation2 + $0x1b0] sm:$0xff]  ;;  %v96_v44 = vld [vmem:[#allocation2 + $0x198] sm:$0xff]  ;;  %v780_v47 = vcombine.low %v88_v36, %v92_v37 }
  0x3d   :  { %408 = vmatprep.subr.bf16.mxu0 %v775_v45  ;;  %461 = vmatprep.subr.bf16.mxu1 %v777_v46  ;;  %v100_v45 = vld [vmem:[#allocation2 + $0x1b8] sm:$0xff]  ;;  %v778_v46 = vcombine.low %v87_v34, %v91_v35  ;;  %v787_v48 = vcombine.high %v95_v42, %v99_v43  ;;  %v786_v50 = vcombine.low %v95_v42, %v99_v43 }
  0x3e   :  { %v789_v49 = vcombine.high %v96_v44, %v100_v45 }
  0x40   :  { %409 = vmatpush1.bf16.msra.mxu0 %v774_v51  ;;  %462 = vmatpush1.bf16.msra.mxu1 %v776_v52  ;;  %v788_v51 = vcombine.low %v96_v44, %v100_v45 }
  0x41   :  { %410 = vmatprep.subr.bf16.mxu0 %v783_v53  ;;  %463 = vmatprep.subr.bf16.mxu1 %v785_v54 }
  0x44   :  { %411 = vmatpush1.bf16.msra.mxu0 %v782_v59  ;;  %464 = vmatpush1.bf16.msra.mxu1 %v784_v60 }
  0x45   :  { %504 = vmatprep.subr.bf16.mxu0 %v739_v61  ;;  %557 = vmatprep.subr.bf16.mxu1 %v741_v62 }
  0x47   :  { %790 = vmatmul.mubr.msk.bf16.vlgmr.msra.gmra.mrb[0].mxu0 %vm391_vm0, %v948_v2  ;;  %792 = vmatmul.mubr.msk.bf16.vlgmr.msra.gmra.mrb[0].mxu1 %vm391_vm0, %v948_v2 }
  0x48   :  { %505 = vmatpush1.bf16.msra.mxu0 %v738_v5  ;;  %558 = vmatpush1.bf16.msra.mxu1 %v740_v6 }
  0x49   :  { %506 = vmatprep.subr.bf16.mxu0 %v747_v7  ;;  %559 = vmatprep.subr.bf16.mxu1 %v749_v8 }
  0x4a   :  { %440 = vmatprep.mubr.bf16.mxu0 %v902_v0  ;;  %493 = vmatprep.mubr.bf16.mxu1 %v902_v0 }
  0x4c   :  { %507 = vmatpush1.bf16.msra.mxu0 %v746_v13  ;;  %560 = vmatpush1.bf16.msra.mxu1 %v748_v14 }
  0x4d   :  { %508 = vmatprep.subr.bf16.mxu0 %v755_v15  ;;  %561 = vmatprep.subr.bf16.mxu1 %v757_v16 }
  0x4f   :  { %791 = vmatmul.mubr.msk.bf16.gmra.mrb[4].mxu0 %vm391_vm0, %v956_v19  ;;  %793 = vmatmul.mubr.msk.bf16.gmra.mrb[4].mxu1 %vm391_vm0, %v956_v19 }
  0x50   :  { %509 = vmatpush1.bf16.msra.mxu0 %v754_v22  ;;  %562 = vmatpush1.bf16.msra.mxu1 %v756_v23 }
  0x51   :  { %510 = vmatprep.subr.bf16.mxu0 %v763_v24  ;;  %563 = vmatprep.subr.bf16.mxu1 %v765_v25 }
  0x52   :  { %536 = vmatprep.mubr.bf16.mxu0 %v902_v0  ;;  %589 = vmatprep.mubr.bf16.mxu1 %v902_v0 }
  0x54   :  { %511 = vmatpush1.bf16.msra.mxu0 %v762_v30  ;;  %564 = vmatpush1.bf16.msra.mxu1 %v764_v31 }
  0x55   :  { %512 = vmatprep.subr.bf16.mxu0 %v771_v32  ;;  %565 = vmatprep.subr.bf16.mxu1 %v773_v33 }
  0x58   :  { %513 = vmatpush1.bf16.msra.mxu0 %v770_v38  ;;  %566 = vmatpush1.bf16.msra.mxu1 %v772_v39 }
  0x59   :  { %514 = vmatprep.subr.bf16.mxu0 %v779_v40  ;;  %567 = vmatprep.subr.bf16.mxu1 %v781_v41 }
  0x5c   :  { %515 = vmatpush1.bf16.msra.mxu0 %v778_v46  ;;  %568 = vmatpush1.bf16.msra.mxu1 %v780_v47 }
  0x5d   :  { %516 = vmatprep.subr.bf16.mxu0 %v787_v48  ;;  %569 = vmatprep.subr.bf16.mxu1 %v789_v49 }
  0x60   :  { %517 = vmatpush1.bf16.msra.mxu0 %v786_v50  ;;  %570 = vmatpush1.bf16.msra.mxu1 %v788_v51 }
  0x63   :  { %794 = vmatmul.mubr.msk.bf16.vlgmr.msra.gmra.mrb[8].mxu0 %vm391_vm0, %v948_v2  ;;  %796 = vmatmul.mubr.msk.bf16.vlgmr.msra.gmra.mrb[8].mxu1 %vm391_vm0, %v948_v2 }
  0x64   :  { %546 = vmatprep.mubr.bf16.mxu0 %v902_v0  ;;  %599 = vmatprep.mubr.bf16.mxu1 %v902_v0 }
  0x6b   :  { %795 = vmatmul.mubr.msk.bf16.gmra.mrb[12].mxu0 %vm391_vm0, %v956_v19  ;;  %797 = vmatmul.mubr.msk.bf16.gmra.mrb[12].mxu1 %vm391_vm0, %v956_v19 }
 0x11a   :  { %v432_v52 = vpop.f32.mrb[0].mxu0  ;;  %v485_v53 = vpop.f32.mrb[0].mxu1 }
 0x11b   :  { %v434_v54 = vpop.f32.mrb[1].mxu0  ;;  %v487_v55 = vpop.f32.mrb[1].mxu1  ;;  %v610_v60 = vmax.f32 %v432_v52, 0.0  ;;  %v612_v61 = vmax.f32 %v485_v53, 0.0 }
 0x11c   :  { %v436_v56 = vpop.f32.mrb[2].mxu0  ;;  %v489_v57 = vpop.f32.mrb[2].mxu1  ;;  %v611_v62 = vmax.f32 %v434_v54, 0.0  ;;  %v613_v1 = vmax.f32 %v487_v55, 0.0 }
 0x11d   :  { %v438_v58 = vpop.f32.mrb[3].mxu0  ;;  %v491_v59 = vpop.f32.mrb[3].mxu1  ;;  %v618_v0 = vmax.f32 %v436_v56, 0.0  ;;  %v620_v5 = vmax.f32 %v489_v57, 0.0 }
 0x11e   :  { %v619_v6 = vmax.f32 %v438_v58, 0.0  ;;  %v621_v11 = vmax.f32 %v491_v59, 0.0 }
 0x122   :  { %v442_v63 = vpop.f32.mrb[4].mxu0  ;;  %v495_v3 = vpop.f32.mrb[4].mxu1 }
 0x123   :  { %v626_v2 = vadd.f32 %v610_v60, %v442_v63  ;;  %v444_v4 = vpop.f32.mrb[5].mxu0  ;;  %v628_v7 = vadd.f32 %v612_v61, %v495_v3  ;;  %v497_v9 = vpop.f32.mrb[5].mxu1 }
 0x124   :  { %v627_v8 = vadd.f32 %v611_v62, %v444_v4  ;;  %v446_v10 = vpop.f32.mrb[6].mxu0  ;;  %v629_v13 = vadd.f32 %v613_v1, %v497_v9  ;;  %v499_v15 = vpop.f32.mrb[6].mxu1 }
 0x125   :  { %v642_v12 = vmax.f32 %v626_v2, 0.0  ;;  %v634_v14 = vadd.f32 %v618_v0, %v446_v10  ;;  %v448_v16 = vpop.f32.mrb[7].mxu0  ;;  %v644_v17 = vmax.f32 %v628_v7, 0.0  ;;  %v636_v19 = vadd.f32 %v620_v5, %v499_v15  ;;  %v501_v21 = vpop.f32.mrb[7].mxu1 }
 0x126   :  { %v643_v18 = vmax.f32 %v627_v8, 0.0  ;;  %v635_v20 = vadd.f32 %v619_v6, %v448_v16  ;;  %v645_v22 = vmax.f32 %v629_v13, 0.0  ;;  %v637_v24 = vadd.f32 %v621_v11, %v501_v21 }
 0x127   :  { %v650_v23 = vmax.f32 %v634_v14, 0.0  ;;  %v652_v26 = vmax.f32 %v636_v19, 0.0 }
 0x128   :  { %v806_v25 = vpack.c.bf16 %v643_v18, %v642_v12  ;;  %v651_v27 = vmax.f32 %v635_v20, 0.0  ;;  %v807_v28 = vpack.c.bf16 %v645_v22, %v644_v17  ;;  %v653_v29 = vmax.f32 %v637_v24, 0.0 }
 0x12a   :  { %706 = vst [vmem:[#allocation7] sm:$0xff] %v806_v25  ;;  %v810_v30 = vpack.c.bf16 %v651_v27, %v650_v23  ;;  %707 = vst [vmem:[#allocation7 + $0x8] sm:$0xff] %v807_v28  ;;  %v811_v31 = vpack.c.bf16 %v653_v29, %v652_v26 }
 0x12c   :  { %710 = vst [vmem:[#allocation7 + $0x20] sm:$0xff] %v810_v30  ;;  %711 = vst [vmem:[#allocation7 + $0x28] sm:$0xff] %v811_v31 }
 0x136   :  { %v538_v32 = vpop.f32.mrb[8].mxu0  ;;  %v591_v33 = vpop.f32.mrb[8].mxu1 }
 0x137   :  { %v540_v34 = vpop.f32.mrb[9].mxu0  ;;  %v593_v35 = vpop.f32.mrb[9].mxu1  ;;  %v614_v40 = vmax.f32 %v538_v32, 0.0  ;;  %v616_v41 = vmax.f32 %v591_v33, 0.0 }
 0x138   :  { %v542_v36 = vpop.f32.mrb[10].mxu0  ;;  %v595_v37 = vpop.f32.mrb[10].mxu1  ;;  %v615_v42 = vmax.f32 %v540_v34, 0.0  ;;  %v617_v44 = vmax.f32 %v593_v35, 0.0 }
 0x139   :  { %v544_v38 = vpop.f32.mrb[11].mxu0  ;;  %v597_v39 = vpop.f32.mrb[11].mxu1  ;;  %v622_v45 = vmax.f32 %v542_v36, 0.0  ;;  %v624_v49 = vmax.f32 %v595_v37, 0.0 }
 0x13a   :  { %v623_v50 = vmax.f32 %v544_v38, 0.0  ;;  %v625_v55 = vmax.f32 %v597_v39, 0.0 }
 0x13e   :  { %v548_v43 = vpop.f32.mrb[12].mxu0  ;;  %v601_v47 = vpop.f32.mrb[12].mxu1 }
 0x13f   :  { %v630_v46 = vadd.f32 %v614_v40, %v548_v43  ;;  %v550_v48 = vpop.f32.mrb[13].mxu0  ;;  %v632_v51 = vadd.f32 %v616_v41, %v601_v47  ;;  %v603_v53 = vpop.f32.mrb[13].mxu1 }
 0x140   :  { %v631_v52 = vadd.f32 %v615_v42, %v550_v48  ;;  %v552_v54 = vpop.f32.mrb[14].mxu0  ;;  %v633_v57 = vadd.f32 %v617_v44, %v603_v53  ;;  %v605_v59 = vpop.f32.mrb[14].mxu1 }
 0x141   :  { %v646_v56 = vmax.f32 %v630_v46, 0.0  ;;  %v638_v58 = vadd.f32 %v622_v45, %v552_v54  ;;  %v554_v60 = vpop.f32.mrb[15].mxu0  ;;  %v648_v61 = vmax.f32 %v632_v51, 0.0  ;;  %v640_v63 = vadd.f32 %v624_v49, %v605_v59  ;;  %v607_v0 = vpop.f32.mrb[15].mxu1 }
 0x142   :  { %v647_v62 = vmax.f32 %v631_v52, 0.0  ;;  %v639_v1 = vadd.f32 %v623_v50, %v554_v60  ;;  %v649_v2 = vmax.f32 %v633_v57, 0.0  ;;  %v641_v4 = vadd.f32 %v625_v55, %v607_v0 }
 0x143   :  { %v654_v3 = vmax.f32 %v638_v58, 0.0  ;;  %v656_v6 = vmax.f32 %v640_v63, 0.0 }
 0x144   :  { %v808_v5 = vpack.c.bf16 %v647_v62, %v646_v56  ;;  %v655_v7 = vmax.f32 %v639_v1, 0.0  ;;  %v809_v8 = vpack.c.bf16 %v649_v2, %v648_v61  ;;  %v657_v9 = vmax.f32 %v641_v4, 0.0 }
 0x146   :  { %708 = vst [vmem:[#allocation7 + $0x10] sm:$0xff] %v808_v5  ;;  %v812_v10 = vpack.c.bf16 %v655_v7, %v654_v3  ;;  %709 = vst [vmem:[#allocation7 + $0x18] sm:$0xff] %v809_v8  ;;  %v813_v11 = vpack.c.bf16 %v657_v9, %v656_v6 }
 0x148   :  { %712 = vst [vmem:[#allocation7 + $0x30] sm:$0xff] %v812_v10  ;;  %713 = vst [vmem:[#allocation7 + $0x38] sm:$0xff] %v813_v11 }
 0x149   :  { %879 = shalt.err (!%p876_p6)
}
 0x14a   :  { %s880_s12 = scalar_lea.hbm %s991_s2, 1024 }
 0x14b   :  { %p881_p7 = scmp.ne.s32.totalorder %s991_s2, %s880_s12  ;;  %p884_p8 = scmp.lt.u32.totalorder %s880_s12, %s991_s2 }
 0x14d   :  { %p886_p9 = pnand %p884_p8, %p881_p7 }
 0x14f   :  { %889 = shalt.err (!%p886_p9)
}
 0x150   :  { %725 = dma.vmem_to_hbm [thread:$0]  %s720_s8, 1024, %s991_s2, [#allocation4], %s897_s19, %s897_s19, %s898_s20  }
 0x151   :  { %894 = dma.done.wait [#allocation4], 1024  }
 0x152   :  { %895 = vsyncadd [#allocation4], 4294966272 }
 0x153   :  { %729 = vsyncpa [#allocation3], 1 }
 0x154   :  { %730 = vsyncpa [#allocation6], 1 }
 0x155   :  { %731 = vsyncpa [#allocation4], 1 }

</bundles_post_ra>
